<compile_context>
chip_gen: v7x
topology: tpu7x:2x2x1
jax: 0.10.0
libtpu: 0.0.40
codegen_flags: <defaults>
</compile_context>

<pallas_src>
import numpy as np
import jax
import jax.numpy as jnp
from jax.experimental import pallas as pl
from jax.experimental.pallas import tpu as pltpu


LANE = 128  # lane-dense padded output-channel count


# ----------------------------------------------------------------------------
# Config (mirrors the PyTorch cfg consumed by SparseCNNBase)
# ----------------------------------------------------------------------------
class Cfg:
    VOXEL_SIZE = [0.25, 0.25, 0.25]                       # xyz, exactly representable
    GRID_BOUNDS = [-2.0, -2.0, -1.0, 2.0, 2.0, 1.0]       # (x0,y0,z0, x1,y1,z1)
    STRIDES = (1, 2, 4, 8)


def compute_grid_shape(cfg):
    voxel_size = np.r_[cfg.VOXEL_SIZE]
    lower, upper = np.reshape(cfg.GRID_BOUNDS, (2, 3))
    grid_shape = (upper - lower) / voxel_size + [0, 0, 1]
    grid_shape = np.int32(grid_shape)[::-1].tolist()      # ZYX
    return grid_shape


# ----------------------------------------------------------------------------
# Tap-volume construction (plain-JAX glue, replaces the HBM im2col)
# ----------------------------------------------------------------------------
def build_tap_volume(x, stride, ksize=3, pad=1):
    """x: (N, D, H, W, C) -> V: (N, D+2*pad, Ho*Wo, ksize*ksize*C) in bf16.

    V[n, d, ho*Wo + wo, (kh*ksize + kw)*C + c] = xpad[n, d, sh*ho + kh, sw*wo + kw, c]
    """
    N, D, H, W, C = x.shape
    sd, sh, sw = stride
    xb = x.astype(jnp.bfloat16)
    xp = jnp.pad(xb, ((0, 0), (pad, pad), (pad, pad), (pad, pad), (0, 0)))
    Do = (D + 2 * pad - ksize) // sd + 1
    Ho = (H + 2 * pad - ksize) // sh + 1
    Wo = (W + 2 * pad - ksize) // sw + 1
    slabs = []
    for kh in range(ksize):
        for kw in range(ksize):
            slabs.append(xp[:, :, kh:kh + (Ho - 1) * sh + 1:sh,
                            kw:kw + (Wo - 1) * sw + 1:sw, :])
    V = jnp.stack(slabs, axis=-2)                           # (N, Dp, Ho, Wo, 9, C)
    V = V.reshape(N, D + 2 * pad, Ho * Wo, ksize * ksize * C)
    return V, (Do, Ho, Wo)


# ----------------------------------------------------------------------------
# Fused Pallas kernel: 3x3x3 conv (stride sd,sh,sw) + folded BN + ReLU
# ----------------------------------------------------------------------------
def _make_conv_kernel(Do, Ho, Wo, sd, coutp, ksize=3):
    HW = Ho * Wo

    def kernel(v_ref, w_ref, shift_ref, o_ref):
        # v_ref    : (1, Dp, HW, 9*Cin)     bf16  tap volume for one batch element
        # w_ref    : (ksize, 9*Cin, coutp)  bf16  BN-scale-folded conv weights
        # shift_ref: (1, coutp)             f32   folded BN shift (zero on pad channels)
        # o_ref    : (1, Do*HW, coutp)      f32   lane-dense output rows
        for do in range(Do):
            acc = jnp.zeros((HW, coutp), jnp.float32)
            for kd in range(ksize):
                a = v_ref[0, sd * do + kd]                   # (HW, 9*Cin) bf16
                acc = acc + jnp.dot(a, w_ref[kd],
                                    preferred_element_type=jnp.float32)
            o_ref[0, do * HW:(do + 1) * HW, :] = jnp.maximum(
                acc + shift_ref[...], 0.0)

    return kernel


def conv3d_bn_relu_block(x, w_packed, shift_pad, stride, cout):
    """x: (N,D,H,W,Cin) f32; w_packed: (3, 9*Cin, 128) bf16; shift_pad: (1,128) f32."""
    N, D, H, W, Cin = x.shape
    V, (Do, Ho, Wo) = build_tap_volume(x, stride)
    Dp = V.shape[1]
    HW = Ho * Wo
    Mb = Do * HW
    KC = V.shape[-1]
    coutp = w_packed.shape[-1]
    kernel = _make_conv_kernel(Do, Ho, Wo, stride[0], coutp)

    out = pl.pallas_call(
        kernel,
        out_shape=jax.ShapeDtypeStruct((N, Mb, coutp), jnp.float32),
        grid=(N,),
        in_specs=[
            pl.BlockSpec((1, Dp, HW, KC), lambda n: (n, 0, 0, 0)),
            pl.BlockSpec((3, KC, coutp), lambda n: (0, 0, 0)),
            pl.BlockSpec((1, coutp), lambda n: (0, 0)),
        ],
        out_specs=pl.BlockSpec((1, Mb, coutp), lambda n: (n, 0, 0)),
        compiler_params=pltpu.CompilerParams(dimension_semantics=("parallel",)),
        cost_estimate=pl.CostEstimate(
            flops=2 * N * Mb * 3 * KC * coutp,
            transcendentals=0,
            bytes_accessed=V.size * 2 + w_packed.size * 2
                           + shift_pad.size * 4 + N * Mb * coutp * 4),
    )(V, w_packed, shift_pad)

    return out[..., :cout].reshape(N, Do, Ho, Wo, cout)


# ----------------------------------------------------------------------------
# Plain-jnp reference (same bf16 rounding of inputs/weights, f32 accumulation)
# ----------------------------------------------------------------------------
def conv_block_reference(x, w_folded, shift, stride):
    xb = x.astype(jnp.bfloat16).astype(jnp.float32)
    wb = w_folded.astype(jnp.bfloat16).astype(jnp.float32)
    y = jax.lax.conv_general_dilated(
        xb, wb, window_strides=stride, padding=[(1, 1)] * 3,
        dimension_numbers=("NDHWC", "DHWIO", "NDHWC"),
        preferred_element_type=jnp.float32)
    return jnp.maximum(y + shift.reshape(1, 1, 1, 1, -1), 0.0)


# ----------------------------------------------------------------------------
# SparseCNNBase equivalent (dense emulation of spconv)
# ----------------------------------------------------------------------------
class SparseCNNPallas:
    def __init__(self, cfg, key):
        self.cfg = cfg
        self.grid_shape = compute_grid_shape(cfg)              # [D, H, W] (ZYX)
        self.base_voxel_size = jnp.asarray(cfg.VOXEL_SIZE, jnp.float32)
        self.voxel_offset = jnp.asarray(cfg.GRID_BOUNDS[:3], jnp.float32)
        self.make_blocks(cfg, key)

    def make_blocks(self, cfg, key):
        channels = [4, 32, 64, 64, 64]
        strides = [(2, 2, 2), (2, 2, 2), (2, 2, 2), (2, 1, 1)]
        eps = 1e-5
        self.blocks = []
        for i, (cin, cout) in enumerate(zip(channels[:-1], channels[1:])):
            key, sub = jax.random.split(key)
            fan_out = cout * 27                                 # kaiming fan_out, relu
            w = jax.random.normal(sub, (3, 3, 3, cin, cout), jnp.float32) * np.sqrt(2.0 / fan_out)
            gamma = jnp.ones((cout,), jnp.float32)              # BN init: weight=1, bias=0
            beta = jnp.zeros((cout,), jnp.float32)
            run_mean = jnp.zeros((cout,), jnp.float32)
            run_var = jnp.ones((cout,), jnp.float32)
            scale = gamma / jnp.sqrt(run_var + eps)
            shift = beta - run_mean * scale
            w_folded = w * scale                                # fold BN scale into weights
            w_pad = jnp.pad(w_folded, ((0, 0), (0, 0), (0, 0), (0, 0), (0, LANE - cout)))
            shift_pad = jnp.pad(shift, (0, LANE - cout)).reshape(1, LANE)
            # kernel layout: (kd, (kh,kw,cin), cout_padded), bf16 for the MXU
            w_packed = w_pad.reshape(3, 9 * cin, LANE).astype(jnp.bfloat16)
            self.blocks.append(dict(w_packed=w_packed, shift_pad=shift_pad,
                                    w_folded=w_folded, shift=shift,
                                    stride=strides[i], cin=cin, cout=cout))

    # ---- to_global: sparse input level (exact indices available) ------------
    def to_global_sparse(self, stride, features, coordinates, batch_size):
        index = coordinates[:, ::-1]                            # (b,z,y,x) -> (x,y,z,b)
        voxel_size = self.base_voxel_size * stride
        xyz = index[:, 0:3].astype(jnp.float32) * voxel_size + self.voxel_offset
        # TODO(synk): torch random_choice-based batch padding has no deterministic
        # Pallas equivalent; inputs are built with equal per-batch counts so pad=0.
        per = features.shape[0] // batch_size
        xyz = xyz.reshape(batch_size, per, 3)
        feat = features.reshape(batch_size, per, -1)
        return xyz, feat

    # ---- to_global: dense-emulated levels (all voxels treated active) -------
    def to_global_dense(self, stride, vol):
        # TODO(synk): spconv active-index propagation is data dependent; dense
        # emulation treats every voxel of the level as active.
        N, D, H, W, C = vol.shape
        zz, yy, xx = jnp.meshgrid(jnp.arange(D), jnp.arange(H), jnp.arange(W), indexing="ij")
        idx_xyz = jnp.stack([xx, yy, zz], axis=-1).reshape(-1, 3).astype(jnp.float32)
        voxel_size = self.base_voxel_size * stride
        xyz = idx_xyz * voxel_size + self.voxel_offset
        xyz = jnp.broadcast_to(xyz[None], (N, D * H * W, 3))
        feat = vol.reshape(N, D * H * W, C)
        return xyz, feat

    def to_bev(self, vol):
        # channels-last (N,D,H,W,C) -> torch dense (N,C,D,H,W) -> view (N, C*D, H, W)
        N, D, H, W, C = vol.shape
        v = jnp.transpose(vol, (0, 4, 1, 2, 3))
        return v.reshape(N, C * D, H, W)

    def dense_volumes(self, features, coordinates, batch_size):
        D, H, W = self.grid_shape
        C = features.shape[-1]
        # equivalent of spconv.SparseConvTensor(...).dense(), channels-last
        x0 = jnp.zeros((batch_size, D, H, W, C), jnp.float32)
        b, z, y, x = (coordinates[:, 0], coordinates[:, 1],
                      coordinates[:, 2], coordinates[:, 3])
        x0 = x0.at[b, z, y, x].set(features)
        vols = [x0]
        for blk in self.blocks:
            vols.append(conv3d_bn_relu_block(vols[-1], blk["w_packed"],
                                             blk["shift_pad"], blk["stride"],
                                             blk["cout"]))
        return vols

    def forward(self, features, coordinates, batch_size):
        x0, x1, x2, x3, x4 = self.dense_volumes(features, coordinates, batch_size)
        bev = self.to_bev(x4)
        pyramid = [self.to_global_sparse(self.cfg.STRIDES[0], features, coordinates, batch_size)]
        for stride, vol in zip(self.cfg.STRIDES[1:], (x1, x2, x3)):
            pyramid.append(self.to_global_dense(stride, vol))
        return pyramid, bev


# ----------------------------------------------------------------------------
if __name__ == "__main__":
    cfg = Cfg()
    key = jax.random.PRNGKey(0)
    model_key, data_key = jax.random.split(key)
    model = SparseCNNPallas(cfg, model_key)

    batch_size = 2
    voxels_per_batch = 64
    D, H, W = model.grid_shape

    # deterministic unique sparse coordinates, sorted by batch, equal counts
    coords = []
    k = data_key
    for bidx in range(batch_size):
        k, sub = jax.random.split(k)
        lin = jax.random.permutation(sub, D * H * W)[:voxels_per_batch]
        z = (lin // (H * W)).astype(jnp.int32)
        y = ((lin // W) % H).astype(jnp.int32)
        x = (lin % W).astype(jnp.int32)
        bcol = jnp.full((voxels_per_batch,), bidx, jnp.int32)
        coords.append(jnp.stack([bcol, z, y, x], axis=-1))
    coordinates = jnp.concatenate(coords, axis=0)
    k, sub = jax.random.split(k)
    features = jax.random.normal(sub, (batch_size * voxels_per_batch, 4), jnp.float32)

    # full forward pass
    pyramid, bev = model.forward(features, coordinates, batch_size)
    jax.block_until_ready(bev)
    for xyz_l, feat_l in pyramid:
        jax.block_until_ready(xyz_l)
        jax.block_until_ready(feat_l)
    assert bev.shape == (batch_size, 64 * 1, 2, 2), bev.shape

    # correctness: every fused Pallas conv block vs plain-XLA conv reference
    vols = model.dense_volumes(features, coordinates, batch_size)
    jax.block_until_ready(vols[-1])
    for i, blk in enumerate(model.blocks):
        got = vols[i + 1]
        ref = conv_block_reference(vols[i], blk["w_folded"], blk["shift"], blk["stride"])
        assert got.shape == ref.shape, (i, got.shape, ref.shape)
        assert jnp.allclose(got, ref, atol=1e-3, rtol=1e-3), f"Pallas conv block {i} mismatch"

    print("KERNEL_OK")
</pallas_src>

<mosaic_0001>
module attributes {stable_mosaic.version = 11 : i64} {
  func.func @kernel(%arg0: i32, %arg1: memref<1x11x64x36xbf16, #tpu.memory_space<vmem>>, %arg2: memref<3x36x128xbf16, #tpu.memory_space<vmem>>, %arg3: memref<1x128xf32, #tpu.memory_space<vmem>>, %arg4: memref<1x320x128xf32, #tpu.memory_space<vmem>>) attributes {dimension_semantics = [#tpu.dimension_semantics<parallel>], iteration_bounds = array<i64: 2>, scalar_prefetch = 0 : i64, scratch_operands = 0 : i64, tpu.core_type = #tpu.core_type<tc>, window_params = [{transform_indices = @transform_0, window_bounds = array<i64: 1, 11, 64, 36>}, {pipeline_mode = #tpu.pipeline_mode<synchronous>, transform_indices = @transform_1, window_bounds = array<i64: 3, 36, 128>}, {pipeline_mode = #tpu.pipeline_mode<synchronous>, transform_indices = @transform_2, window_bounds = array<i64: 1, 128>}, {transform_indices = @transform_3, window_bounds = array<i64: 1, 320, 128>}]} {
    %cst = arith.constant 0.000000e+00 : f32
    %0 = vector.broadcast %cst : f32 to vector<64x128xf32>
    %c0 = arith.constant 0 : index
    %c0_0 = arith.constant 0 : index
    %c0_1 = arith.constant 0 : index
    %c0_2 = arith.constant 0 : index
    %1 = vector.load %arg1[%c0, %c0_0, %c0_1, %c0_2] : memref<1x11x64x36xbf16, #tpu.memory_space<vmem>>, vector<1x1x64x36xbf16>
    %2 = vector.shape_cast %1 : vector<1x1x64x36xbf16> to vector<64x36xbf16>
    %c0_3 = arith.constant 0 : index
    %c0_4 = arith.constant 0 : index
    %c0_5 = arith.constant 0 : index
    %3 = vector.load %arg2[%c0_3, %c0_4, %c0_5] : memref<3x36x128xbf16, #tpu.memory_space<vmem>>, vector<1x36x128xbf16>
    %4 = vector.shape_cast %3 : vector<1x36x128xbf16> to vector<36x128xbf16>
    %cst_6 = arith.constant dense<0.000000e+00> : vector<64x128xf32>
    %5 = tpu.matmul %2, %4, %cst_6 {dimension_numbers = #tpu.dot_dimension_numbers<[1], [0], [0], [1], [0, 0, 1, 1], [], []>} : vector<64x36xbf16>, vector<36x128xbf16>, vector<64x128xf32> -> vector<64x128xf32>
    %6 = arith.addf %0, %5 : vector<64x128xf32>
    %c0_7 = arith.constant 0 : index
    %c1 = arith.constant 1 : index
    %c0_8 = arith.constant 0 : index
    %c0_9 = arith.constant 0 : index
    %7 = vector.load %arg1[%c0_7, %c1, %c0_8, %c0_9] : memref<1x11x64x36xbf16, #tpu.memory_space<vmem>>, vector<1x1x64x36xbf16>
    %8 = vector.shape_cast %7 : vector<1x1x64x36xbf16> to vector<64x36xbf16>
    %c1_10 = arith.constant 1 : index
    %c0_11 = arith.constant 0 : index
    %c0_12 = arith.constant 0 : index
    %9 = vector.load %arg2[%c1_10, %c0_11, %c0_12] : memref<3x36x128xbf16, #tpu.memory_space<vmem>>, vector<1x36x128xbf16>
    %10 = vector.shape_cast %9 : vector<1x36x128xbf16> to vector<36x128xbf16>
    %cst_13 = arith.constant dense<0.000000e+00> : vector<64x128xf32>
    %11 = tpu.matmul %8, %10, %cst_13 {dimension_numbers = #tpu.dot_dimension_numbers<[1], [0], [0], [1], [0, 0, 1, 1], [], []>} : vector<64x36xbf16>, vector<36x128xbf16>, vector<64x128xf32> -> vector<64x128xf32>
    %12 = arith.addf %6, %11 : vector<64x128xf32>
    %c0_14 = arith.constant 0 : index
    %c2 = arith.constant 2 : index
    %c0_15 = arith.constant 0 : index
    %c0_16 = arith.constant 0 : index
    %13 = vector.load %arg1[%c0_14, %c2, %c0_15, %c0_16] : memref<1x11x64x36xbf16, #tpu.memory_space<vmem>>, vector<1x1x64x36xbf16>
    %14 = vector.shape_cast %13 : vector<1x1x64x36xbf16> to vector<64x36xbf16>
    %c2_17 = arith.constant 2 : index
    %c0_18 = arith.constant 0 : index
    %c0_19 = arith.constant 0 : index
    %15 = vector.load %arg2[%c2_17, %c0_18, %c0_19] : memref<3x36x128xbf16, #tpu.memory_space<vmem>>, vector<1x36x128xbf16>
    %16 = vector.shape_cast %15 : vector<1x36x128xbf16> to vector<36x128xbf16>
    %cst_20 = arith.constant dense<0.000000e+00> : vector<64x128xf32>
    %17 = tpu.matmul %14, %16, %cst_20 {dimension_numbers = #tpu.dot_dimension_numbers<[1], [0], [0], [1], [0, 0, 1, 1], [], []>} : vector<64x36xbf16>, vector<36x128xbf16>, vector<64x128xf32> -> vector<64x128xf32>
    %18 = arith.addf %12, %17 : vector<64x128xf32>
    %c0_21 = arith.constant 0 : index
    %c0_22 = arith.constant 0 : index
    %19 = vector.load %arg3[%c0_21, %c0_22] : memref<1x128xf32, #tpu.memory_space<vmem>>, vector<1x128xf32>
    %20 = vector.broadcast %19 : vector<1x128xf32> to vector<64x128xf32>
    %21 = arith.addf %18, %20 : vector<64x128xf32>
    %cst_23 = arith.constant 0.000000e+00 : f32
    %22 = vector.broadcast %cst_23 : f32 to vector<64x128xf32>
    %23 = arith.maximumf %21, %22 : vector<64x128xf32>
    %c0_24 = arith.constant 0 : index
    %c0_25 = arith.constant 0 : index
    %c0_26 = arith.constant 0 : index
    %24 = vector.load %arg4[%c0_24, %c0_25, %c0_26] : memref<1x320x128xf32, #tpu.memory_space<vmem>>, vector<1x64x128xf32>
    %25 = vector.shape_cast %24 : vector<1x64x128xf32> to vector<64x128xf32>
    %26 = vector.shape_cast %23 : vector<64x128xf32> to vector<1x64x128xf32>
    tpu.vector_store %arg4[%c0_24, %c0_25, %c0_26], %26 {strides = array<i32>} : memref<1x320x128xf32, #tpu.memory_space<vmem>>, vector<1x64x128xf32>,
    %cst_27 = arith.constant 0.000000e+00 : f32
    %27 = vector.broadcast %cst_27 : f32 to vector<64x128xf32>
    %c0_28 = arith.constant 0 : index
    %c2_29 = arith.constant 2 : index
    %c0_30 = arith.constant 0 : index
    %c0_31 = arith.constant 0 : index
    %28 = vector.load %arg1[%c0_28, %c2_29, %c0_30, %c0_31] : memref<1x11x64x36xbf16, #tpu.memory_space<vmem>>, vector<1x1x64x36xbf16>
    %29 = vector.shape_cast %28 : vector<1x1x64x36xbf16> to vector<64x36xbf16>
    %c0_32 = arith.constant 0 : index
    %c0_33 = arith.constant 0 : index
    %c0_34 = arith.constant 0 : index
    %30 = vector.load %arg2[%c0_32, %c0_33, %c0_34] : memref<3x36x128xbf16, #tpu.memory_space<vmem>>, vector<1x36x128xbf16>
    %31 = vector.shape_cast %30 : vector<1x36x128xbf16> to vector<36x128xbf16>
    %cst_35 = arith.constant dense<0.000000e+00> : vector<64x128xf32>
    %32 = tpu.matmul %29, %31, %cst_35 {dimension_numbers = #tpu.dot_dimension_numbers<[1], [0], [0], [1], [0, 0, 1, 1], [], []>} : vector<64x36xbf16>, vector<36x128xbf16>, vector<64x128xf32> -> vector<64x128xf32>
    %33 = arith.addf %27, %32 : vector<64x128xf32>
    %c0_36 = arith.constant 0 : index
    %c3 = arith.constant 3 : index
    %c0_37 = arith.constant 0 : index
    %c0_38 = arith.constant 0 : index
    %34 = vector.load %arg1[%c0_36, %c3, %c0_37, %c0_38] : memref<1x11x64x36xbf16, #tpu.memory_space<vmem>>, vector<1x1x64x36xbf16>
    %35 = vector.shape_cast %34 : vector<1x1x64x36xbf16> to vector<64x36xbf16>
    %c1_39 = arith.constant 1 : index
    %c0_40 = arith.constant 0 : index
    %c0_41 = arith.constant 0 : index
    %36 = vector.load %arg2[%c1_39, %c0_40, %c0_41] : memref<3x36x128xbf16, #tpu.memory_space<vmem>>, vector<1x36x128xbf16>
    %37 = vector.shape_cast %36 : vector<1x36x128xbf16> to vector<36x128xbf16>
    %cst_42 = arith.constant dense<0.000000e+00> : vector<64x128xf32>
    %38 = tpu.matmul %35, %37, %cst_42 {dimension_numbers = #tpu.dot_dimension_numbers<[1], [0], [0], [1], [0, 0, 1, 1], [], []>} : vector<64x36xbf16>, vector<36x128xbf16>, vector<64x128xf32> -> vector<64x128xf32>
    %39 = arith.addf %33, %38 : vector<64x128xf32>
    %c0_43 = arith.constant 0 : index
    %c4 = arith.constant 4 : index
    %c0_44 = arith.constant 0 : index
    %c0_45 = arith.constant 0 : index
    %40 = vector.load %arg1[%c0_43, %c4, %c0_44, %c0_45] : memref<1x11x64x36xbf16, #tpu.memory_space<vmem>>, vector<1x1x64x36xbf16>
    %41 = vector.shape_cast %40 : vector<1x1x64x36xbf16> to vector<64x36xbf16>
    %c2_46 = arith.constant 2 : index
    %c0_47 = arith.constant 0 : index
    %c0_48 = arith.constant 0 : index
    %42 = vector.load %arg2[%c2_46, %c0_47, %c0_48] : memref<3x36x128xbf16, #tpu.memory_space<vmem>>, vector<1x36x128xbf16>
    %43 = vector.shape_cast %42 : vector<1x36x128xbf16> to vector<36x128xbf16>
    %cst_49 = arith.constant dense<0.000000e+00> : vector<64x128xf32>
    %44 = tpu.matmul %41, %43, %cst_49 {dimension_numbers = #tpu.dot_dimension_numbers<[1], [0], [0], [1], [0, 0, 1, 1], [], []>} : vector<64x36xbf16>, vector<36x128xbf16>, vector<64x128xf32> -> vector<64x128xf32>
    %45 = arith.addf %39, %44 : vector<64x128xf32>
    %c0_50 = arith.constant 0 : index
    %c0_51 = arith.constant 0 : index
    %46 = vector.load %arg3[%c0_50, %c0_51] : memref<1x128xf32, #tpu.memory_space<vmem>>, vector<1x128xf32>
    %47 = vector.broadcast %46 : vector<1x128xf32> to vector<64x128xf32>
    %48 = arith.addf %45, %47 : vector<64x128xf32>
    %cst_52 = arith.constant 0.000000e+00 : f32
    %49 = vector.broadcast %cst_52 : f32 to vector<64x128xf32>
    %50 = arith.maximumf %48, %49 : vector<64x128xf32>
    %c0_53 = arith.constant 0 : index
    %c64 = arith.constant 64 : index
    %c0_54 = arith.constant 0 : index
    %51 = vector.load %arg4[%c0_53, %c64, %c0_54] : memref<1x320x128xf32, #tpu.memory_space<vmem>>, vector<1x64x128xf32>
    %52 = vector.shape_cast %51 : vector<1x64x128xf32> to vector<64x128xf32>
    %53 = vector.shape_cast %50 : vector<64x128xf32> to vector<1x64x128xf32>
    tpu.vector_store %arg4[%c0_53, %c64, %c0_54], %53 {strides = array<i32>} : memref<1x320x128xf32, #tpu.memory_space<vmem>>, vector<1x64x128xf32>,
    %cst_55 = arith.constant 0.000000e+00 : f32
    %54 = vector.broadcast %cst_55 : f32 to vector<64x128xf32>
    %c0_56 = arith.constant 0 : index
    %c4_57 = arith.constant 4 : index
    %c0_58 = arith.constant 0 : index
    %c0_59 = arith.constant 0 : index
    %55 = vector.load %arg1[%c0_56, %c4_57, %c0_58, %c0_59] : memref<1x11x64x36xbf16, #tpu.memory_space<vmem>>, vector<1x1x64x36xbf16>
    %56 = vector.shape_cast %55 : vector<1x1x64x36xbf16> to vector<64x36xbf16>
    %c0_60 = arith.constant 0 : index
    %c0_61 = arith.constant 0 : index
    %c0_62 = arith.constant 0 : index
    %57 = vector.load %arg2[%c0_60, %c0_61, %c0_62] : memref<3x36x128xbf16, #tpu.memory_space<vmem>>, vector<1x36x128xbf16>
    %58 = vector.shape_cast %57 : vector<1x36x128xbf16> to vector<36x128xbf16>
    %cst_63 = arith.constant dense<0.000000e+00> : vector<64x128xf32>
    %59 = tpu.matmul %56, %58, %cst_63 {dimension_numbers = #tpu.dot_dimension_numbers<[1], [0], [0], [1], [0, 0, 1, 1], [], []>} : vector<64x36xbf16>, vector<36x128xbf16>, vector<64x128xf32> -> vector<64x128xf32>
    %60 = arith.addf %54, %59 : vector<64x128xf32>
    %c0_64 = arith.constant 0 : index
    %c5 = arith.constant 5 : index
    %c0_65 = arith.constant 0 : index
    %c0_66 = arith.constant 0 : index
    %61 = vector.load %arg1[%c0_64, %c5, %c0_65, %c0_66] : memref<1x11x64x36xbf16, #tpu.memory_space<vmem>>, vector<1x1x64x36xbf16>
    %62 = vector.shape_cast %61 : vector<1x1x64x36xbf16> to vector<64x36xbf16>
    %c1_67 = arith.constant 1 : index
    %c0_68 = arith.constant 0 : index
    %c0_69 = arith.constant 0 : index
    %63 = vector.load %arg2[%c1_67, %c0_68, %c0_69] : memref<3x36x128xbf16, #tpu.memory_space<vmem>>, vector<1x36x128xbf16>
    %64 = vector.shape_cast %63 : vector<1x36x128xbf16> to vector<36x128xbf16>
    %cst_70 = arith.constant dense<0.000000e+00> : vector<64x128xf32>
    %65 = tpu.matmul %62, %64, %cst_70 {dimension_numbers = #tpu.dot_dimension_numbers<[1], [0], [0], [1], [0, 0, 1, 1], [], []>} : vector<64x36xbf16>, vector<36x128xbf16>, vector<64x128xf32> -> vector<64x128xf32>
    %66 = arith.addf %60, %65 : vector<64x128xf32>
    %c0_71 = arith.constant 0 : index
    %c6 = arith.constant 6 : index
    %c0_72 = arith.constant 0 : index
    %c0_73 = arith.constant 0 : index
    %67 = vector.load %arg1[%c0_71, %c6, %c0_72, %c0_73] : memref<1x11x64x36xbf16, #tpu.memory_space<vmem>>, vector<1x1x64x36xbf16>
    %68 = vector.shape_cast %67 : vector<1x1x64x36xbf16> to vector<64x36xbf16>
    %c2_74 = arith.constant 2 : index
    %c0_75 = arith.constant 0 : index
    %c0_76 = arith.constant 0 : index
    %69 = vector.load %arg2[%c2_74, %c0_75, %c0_76] : memref<3x36x128xbf16, #tpu.memory_space<vmem>>, vector<1x36x128xbf16>
    %70 = vector.shape_cast %69 : vector<1x36x128xbf16> to vector<36x128xbf16>
    %cst_77 = arith.constant dense<0.000000e+00> : vector<64x128xf32>
    %71 = tpu.matmul %68, %70, %cst_77 {dimension_numbers = #tpu.dot_dimension_numbers<[1], [0], [0], [1], [0, 0, 1, 1], [], []>} : vector<64x36xbf16>, vector<36x128xbf16>, vector<64x128xf32> -> vector<64x128xf32>
    %72 = arith.addf %66, %71 : vector<64x128xf32>
    %c0_78 = arith.constant 0 : index
    %c0_79 = arith.constant 0 : index
    %73 = vector.load %arg3[%c0_78, %c0_79] : memref<1x128xf32, #tpu.memory_space<vmem>>, vector<1x128xf32>
    %74 = vector.broadcast %73 : vector<1x128xf32> to vector<64x128xf32>
    %75 = arith.addf %72, %74 : vector<64x128xf32>
    %cst_80 = arith.constant 0.000000e+00 : f32
    %76 = vector.broadcast %cst_80 : f32 to vector<64x128xf32>
    %77 = arith.maximumf %75, %76 : vector<64x128xf32>
    %c0_81 = arith.constant 0 : index
    %c128 = arith.constant 128 : index
    %c0_82 = arith.constant 0 : index
    %78 = vector.load %arg4[%c0_81, %c128, %c0_82] : memref<1x320x128xf32, #tpu.memory_space<vmem>>, vector<1x64x128xf32>
    %79 = vector.shape_cast %78 : vector<1x64x128xf32> to vector<64x128xf32>
    %80 = vector.shape_cast %77 : vector<64x128xf32> to vector<1x64x128xf32>
    tpu.vector_store %arg4[%c0_81, %c128, %c0_82], %80 {strides = array<i32>} : memref<1x320x128xf32, #tpu.memory_space<vmem>>, vector<1x64x128xf32>,
    %cst_83 = arith.constant 0.000000e+00 : f32
    %81 = vector.broadcast %cst_83 : f32 to vector<64x128xf32>
    %c0_84 = arith.constant 0 : index
    %c6_85 = arith.constant 6 : index
    %c0_86 = arith.constant 0 : index
    %c0_87 = arith.constant 0 : index
    %82 = vector.load %arg1[%c0_84, %c6_85, %c0_86, %c0_87] : memref<1x11x64x36xbf16, #tpu.memory_space<vmem>>, vector<1x1x64x36xbf16>
    %83 = vector.shape_cast %82 : vector<1x1x64x36xbf16> to vector<64x36xbf16>
    %c0_88 = arith.constant 0 : index
    %c0_89 = arith.constant 0 : index
    %c0_90 = arith.constant 0 : index
    %84 = vector.load %arg2[%c0_88, %c0_89, %c0_90] : memref<3x36x128xbf16, #tpu.memory_space<vmem>>, vector<1x36x128xbf16>
    %85 = vector.shape_cast %84 : vector<1x36x128xbf16> to vector<36x128xbf16>
    %cst_91 = arith.constant dense<0.000000e+00> : vector<64x128xf32>
    %86 = tpu.matmul %83, %85, %cst_91 {dimension_numbers = #tpu.dot_dimension_numbers<[1], [0], [0], [1], [0, 0, 1, 1], [], []>} : vector<64x36xbf16>, vector<36x128xbf16>, vector<64x128xf32> -> vector<64x128xf32>
    %87 = arith.addf %81, %86 : vector<64x128xf32>
    %c0_92 = arith.constant 0 : index
    %c7 = arith.constant 7 : index
    %c0_93 = arith.constant 0 : index
    %c0_94 = arith.constant 0 : index
    %88 = vector.load %arg1[%c0_92, %c7, %c0_93, %c0_94] : memref<1x11x64x36xbf16, #tpu.memory_space<vmem>>, vector<1x1x64x36xbf16>
    %89 = vector.shape_cast %88 : vector<1x1x64x36xbf16> to vector<64x36xbf16>
    %c1_95 = arith.constant 1 : index
    %c0_96 = arith.constant 0 : index
    %c0_97 = arith.constant 0 : index
    %90 = vector.load %arg2[%c1_95, %c0_96, %c0_97] : memref<3x36x128xbf16, #tpu.memory_space<vmem>>, vector<1x36x128xbf16>
    %91 = vector.shape_cast %90 : vector<1x36x128xbf16> to vector<36x128xbf16>
    %cst_98 = arith.constant dense<0.000000e+00> : vector<64x128xf32>
    %92 = tpu.matmul %89, %91, %cst_98 {dimension_numbers = #tpu.dot_dimension_numbers<[1], [0], [0], [1], [0, 0, 1, 1], [], []>} : vector<64x36xbf16>, vector<36x128xbf16>, vector<64x128xf32> -> vector<64x128xf32>
    %93 = arith.addf %87, %92 : vector<64x128xf32>
    %c0_99 = arith.constant 0 : index
    %c8 = arith.constant 8 : index
    %c0_100 = arith.constant 0 : index
    %c0_101 = arith.constant 0 : index
    %94 = vector.load %arg1[%c0_99, %c8, %c0_100, %c0_101] : memref<1x11x64x36xbf16, #tpu.memory_space<vmem>>, vector<1x1x64x36xbf16>
    %95 = vector.shape_cast %94 : vector<1x1x64x36xbf16> to vector<64x36xbf16>
    %c2_102 = arith.constant 2 : index
    %c0_103 = arith.constant 0 : index
    %c0_104 = arith.constant 0 : index
    %96 = vector.load %arg2[%c2_102, %c0_103, %c0_104] : memref<3x36x128xbf16, #tpu.memory_space<vmem>>, vector<1x36x128xbf16>
    %97 = vector.shape_cast %96 : vector<1x36x128xbf16> to vector<36x128xbf16>
    %cst_105 = arith.constant dense<0.000000e+00> : vector<64x128xf32>
    %98 = tpu.matmul %95, %97, %cst_105 {dimension_numbers = #tpu.dot_dimension_numbers<[1], [0], [0], [1], [0, 0, 1, 1], [], []>} : vector<64x36xbf16>, vector<36x128xbf16>, vector<64x128xf32> -> vector<64x128xf32>
    %99 = arith.addf %93, %98 : vector<64x128xf32>
    %c0_106 = arith.constant 0 : index
    %c0_107 = arith.constant 0 : index
    %100 = vector.load %arg3[%c0_106, %c0_107] : memref<1x128xf32, #tpu.memory_space<vmem>>, vector<1x128xf32>
    %101 = vector.broadcast %100 : vector<1x128xf32> to vector<64x128xf32>
    %102 = arith.addf %99, %101 : vector<64x128xf32>
    %cst_108 = arith.constant 0.000000e+00 : f32
    %103 = vector.broadcast %cst_108 : f32 to vector<64x128xf32>
    %104 = arith.maximumf %102, %103 : vector<64x128xf32>
    %c0_109 = arith.constant 0 : index
    %c192 = arith.constant 192 : index
    %c0_110 = arith.constant 0 : index
    %105 = vector.load %arg4[%c0_109, %c192, %c0_110] : memref<1x320x128xf32, #tpu.memory_space<vmem>>, vector<1x64x128xf32>
    %106 = vector.shape_cast %105 : vector<1x64x128xf32> to vector<64x128xf32>
    %107 = vector.shape_cast %104 : vector<64x128xf32> to vector<1x64x128xf32>
    tpu.vector_store %arg4[%c0_109, %c192, %c0_110], %107 {strides = array<i32>} : memref<1x320x128xf32, #tpu.memory_space<vmem>>, vector<1x64x128xf32>,
    %cst_111 = arith.constant 0.000000e+00 : f32
    %108 = vector.broadcast %cst_111 : f32 to vector<64x128xf32>
    %c0_112 = arith.constant 0 : index
    %c8_113 = arith.constant 8 : index
    %c0_114 = arith.constant 0 : index
    %c0_115 = arith.constant 0 : index
    %109 = vector.load %arg1[%c0_112, %c8_113, %c0_114, %c0_115] : memref<1x11x64x36xbf16, #tpu.memory_space<vmem>>, vector<1x1x64x36xbf16>
    %110 = vector.shape_cast %109 : vector<1x1x64x36xbf16> to vector<64x36xbf16>
    %c0_116 = arith.constant 0 : index
    %c0_117 = arith.constant 0 : index
    %c0_118 = arith.constant 0 : index
    %111 = vector.load %arg2[%c0_116, %c0_117, %c0_118] : memref<3x36x128xbf16, #tpu.memory_space<vmem>>, vector<1x36x128xbf16>
    %112 = vector.shape_cast %111 : vector<1x36x128xbf16> to vector<36x128xbf16>
    %cst_119 = arith.constant dense<0.000000e+00> : vector<64x128xf32>
    %113 = tpu.matmul %110, %112, %cst_119 {dimension_numbers = #tpu.dot_dimension_numbers<[1], [0], [0], [1], [0, 0, 1, 1], [], []>} : vector<64x36xbf16>, vector<36x128xbf16>, vector<64x128xf32> -> vector<64x128xf32>
    %114 = arith.addf %108, %113 : vector<64x128xf32>
    %c0_120 = arith.constant 0 : index
    %c9 = arith.constant 9 : index
    %c0_121 = arith.constant 0 : index
    %c0_122 = arith.constant 0 : index
    %115 = vector.load %arg1[%c0_120, %c9, %c0_121, %c0_122] : memref<1x11x64x36xbf16, #tpu.memory_space<vmem>>, vector<1x1x64x36xbf16>
    %116 = vector.shape_cast %115 : vector<1x1x64x36xbf16> to vector<64x36xbf16>
    %c1_123 = arith.constant 1 : index
    %c0_124 = arith.constant 0 : index
    %c0_125 = arith.constant 0 : index
    %117 = vector.load %arg2[%c1_123, %c0_124, %c0_125] : memref<3x36x128xbf16, #tpu.memory_space<vmem>>, vector<1x36x128xbf16>
    %118 = vector.shape_cast %117 : vector<1x36x128xbf16> to vector<36x128xbf16>
    %cst_126 = arith.constant dense<0.000000e+00> : vector<64x128xf32>
    %119 = tpu.matmul %116, %118, %cst_126 {dimension_numbers = #tpu.dot_dimension_numbers<[1], [0], [0], [1], [0, 0, 1, 1], [], []>} : vector<64x36xbf16>, vector<36x128xbf16>, vector<64x128xf32> -> vector<64x128xf32>
    %120 = arith.addf %114, %119 : vector<64x128xf32>
    %c0_127 = arith.constant 0 : index
    %c10 = arith.constant 10 : index
    %c0_128 = arith.constant 0 : index
    %c0_129 = arith.constant 0 : index
    %121 = vector.load %arg1[%c0_127, %c10, %c0_128, %c0_129] : memref<1x11x64x36xbf16, #tpu.memory_space<vmem>>, vector<1x1x64x36xbf16>
    %122 = vector.shape_cast %121 : vector<1x1x64x36xbf16> to vector<64x36xbf16>
    %c2_130 = arith.constant 2 : index
    %c0_131 = arith.constant 0 : index
    %c0_132 = arith.constant 0 : index
    %123 = vector.load %arg2[%c2_130, %c0_131, %c0_132] : memref<3x36x128xbf16, #tpu.memory_space<vmem>>, vector<1x36x128xbf16>
    %124 = vector.shape_cast %123 : vector<1x36x128xbf16> to vector<36x128xbf16>
    %cst_133 = arith.constant dense<0.000000e+00> : vector<64x128xf32>
    %125 = tpu.matmul %122, %124, %cst_133 {dimension_numbers = #tpu.dot_dimension_numbers<[1], [0], [0], [1], [0, 0, 1, 1], [], []>} : vector<64x36xbf16>, vector<36x128xbf16>, vector<64x128xf32> -> vector<64x128xf32>
    %126 = arith.addf %120, %125 : vector<64x128xf32>
    %c0_134 = arith.constant 0 : index
    %c0_135 = arith.constant 0 : index
    %127 = vector.load %arg3[%c0_134, %c0_135] : memref<1x128xf32, #tpu.memory_space<vmem>>, vector<1x128xf32>
    %128 = vector.broadcast %127 : vector<1x128xf32> to vector<64x128xf32>
    %129 = arith.addf %126, %128 : vector<64x128xf32>
    %cst_136 = arith.constant 0.000000e+00 : f32
    %130 = vector.broadcast %cst_136 : f32 to vector<64x128xf32>
    %131 = arith.maximumf %129, %130 : vector<64x128xf32>
    %c0_137 = arith.constant 0 : index
    %c256 = arith.constant 256 : index
    %c0_138 = arith.constant 0 : index
    %132 = vector.load %arg4[%c0_137, %c256, %c0_138] : memref<1x320x128xf32, #tpu.memory_space<vmem>>, vector<1x64x128xf32>
    %133 = vector.shape_cast %132 : vector<1x64x128xf32> to vector<64x128xf32>
    %134 = vector.shape_cast %131 : vector<64x128xf32> to vector<1x64x128xf32>
    tpu.vector_store %arg4[%c0_137, %c256, %c0_138], %134 {strides = array<i32>} : memref<1x320x128xf32, #tpu.memory_space<vmem>>, vector<1x64x128xf32>,
    return
  }
  func.func @transform_0(%arg0: i32) -> (i32, i32, i32, i32) {
    %c0_i32 = arith.constant 0 : i32
    %c0_i32_0 = arith.constant 0 : i32
    %c0_i32_1 = arith.constant 0 : i32
    %c0_i32_2 = arith.constant 0 : i32
    return %arg0, %c0_i32, %c0_i32_0, %c0_i32_1 : i32, i32, i32, i32
  }
  func.func @transform_1(%arg0: i32) -> (i32, i32, i32) {
    %c0_i32 = arith.constant 0 : i32
    %c0_i32_0 = arith.constant 0 : i32
    %c0_i32_1 = arith.constant 0 : i32
    %c0_i32_2 = arith.constant 0 : i32
    return %c0_i32, %c0_i32_0, %c0_i32_1 : i32, i32, i32
  }
  func.func @transform_2(%arg0: i32) -> (i32, i32) {
    %c0_i32 = arith.constant 0 : i32
    %c0_i32_0 = arith.constant 0 : i32
    %c0_i32_1 = arith.constant 0 : i32
    return %c0_i32, %c0_i32_0 : i32, i32
  }
  func.func @transform_3(%arg0: i32) -> (i32, i32, i32) {
    %c0_i32 = arith.constant 0 : i32
    %c0_i32_0 = arith.constant 0 : i32
    %c0_i32_1 = arith.constant 0 : i32
    return %arg0, %c0_i32, %c0_i32_0 : i32, i32, i32
  }
}

</mosaic_0001>

<bundles_post_ra>
// kernel: tpu_custom_call.1
= control target key start
LH: loop header
LB: loop body
LE: loop exit
PB: predicated region body
PF: predicated region fallthrough
CT: control target
= control target key end

     0   :  { %8 = vsyncpa [#allocation3], 0  ;;  %s3851_s0 = inlined_call_operand.vmem [shape: bf16[2,11,64,36], index: 0, kind: input, shape index: {}]   ;;  %s3852_s1 = inlined_call_operand.vmem [shape: bf16[3,36,128], index: 1, kind: input, shape index: {}]   ;;  %s3853_s2 = inlined_call_operand.vmem [shape: f32[1,128], index: 2, kind: input, shape index: {}]   ;;  %s3854_s3 = inlined_call_operand.hbm [shape: f32[2,320,128], index: 3, kind: output, shape index: {}]  }
   0x1   :  { %10 = vsyncpa [#allocation3 + $0x1], 0  ;;  %s3368_s12 = smov 0   ;;  %s3370_s13 = smov 0  }
   0x2   :  { %s3372_s14 = smov 0   ;;  %s3374_s15 = smov 0  }
   0x3 LB: > { %s3389_s16 = sadd.s32 4294967295, %s3343_s15   ;;  %s2375_s17 = sadd.s32 4294967294, %s3343_s15   ;;  %s3343_s15 = sphi %s3374_s15, %s3860_s15   ;;  %s3339_s14 = sphi %s3372_s14, %s3859_s14   ;;  %s3335_s13 = sphi %s3370_s13, %s3858_s13   ;;  %s3331_s12 = sphi %s3368_s12, %s3857_s12  }
   0x4   : > { %s3393_s18 = sadd.s32 1, %s3343_s15   ;;  %s91_s19 = sadd.s32 1, %s3339_s14 }
   0x5   : > { %s88_s20 = ssub.s32 %s3343_s15, %s3393_s18  ;;  %p101_p0 = scmp.ne.s32.totalorder %s3339_s14, %s3335_s13 }
   0x6   : > { %p89_p1 = scmp.eq.s32.totalorder %s88_s20, 0  ;;  %p102_p2 = scmp.eq.s32.totalorder %s3389_s16, 1 }
   0x7   : > { %p107_p3 = scmp.ne.s32.totalorder %s3335_s13, %s3331_s12  ;;  %p108_p4 = scmp.eq.s32.totalorder %s2375_s17, 1 }
   0x8   : > { %s3404_s21 = scalar_select %p89_p1, %s3339_s14, %s91_s19  }
   0x9   : > { %p3406_p5 = por %p102_p2, %p101_p0  ;;  %p3410_p6 = por %p108_p4, %p107_p3 }
   0xa   : > { %p2378_p7 = scmp.ge.s32.totalorder %s3343_s15, 1  ;;  %p140_p8 = scmp.lt.s32.totalorder %s3343_s15, 3 }
   0xc   : > { %p141_p9 = pnand %p2378_p7, %p140_p8 }
   0xd   : > { %v3176_v0 = vld [vmem:[%s3852_s1 + $0x14] sm:$0xff] (!%p141_p9)   ;;  %v3177_v1 = vld [vmem:[%s3852_s1] sm:$0xff] (!%p141_p9)   ;;  %p164_p10 = scmp.lt.s32.totalorder (!%p141_p9), %s3389_s16, 1  ;;  %v3179_v3 = vld [vmem:[%s3852_s1 + $0x8] sm:$0xff] (!%p141_p9)   ;;  %vm246_vm0 = vcmask (!%p141_p9), 1041408   ;;  %vm233_vm1 = vcmask (!%p141_p9), 293888  }
   0xe   : > { %144 = sbr.rel (%p141_p9) target bundleno = 376 (0x178), region = 32  ;;  %2820 = vmatprep.subr.bf16.mxu1 (!%p141_p9), %v3176_v0  ;;  %v3178_v2 = vld [vmem:[%s3852_s1 + $0x1c] sm:$0xff] (!%p141_p9)   ;;  %2834 = vmatprep.subr.bf16.mxu0 (!%p141_p9), %v3177_v1  ;;  %v3180_v4 = vld [vmem:[%s3852_s1 + $0x24] ss:$0 sps:$4 sm:$0x33] (!%p141_p9)   ;;  %v3186_v6 = vld [vmem:[%s3852_s1 + $0x14] sm:$0xff] (!%p141_p9)  }
   0xf   : > { %2821 = vmatpush3.bf16.msra.mxu1 (!%p141_p9), %v3176_v0  ;;  %2835 = vmatpush3.bf16.msra.mxu0 (!%p141_p9), %v3177_v1  ;;  %v3181_v5 = vld [vmem:[%s3852_s1 + $0x10] ss:$0 sps:$4 sm:$0x33] (!%p141_p9)   ;;  %v3187_v7 = vld [vmem:[%s3852_s1 + $0x28] sm:$0xff] (!%p141_p9)   ;;  %v248_v8 = vsel (!%p141_p9), %vm246_vm0, %v3180_v4, 0  ;;  %v3188_v13 = vld [vmem:[%s3852_s1 + $0x1c] sm:$0xff] (!%p141_p9)  }
  0x10   : > { %2822 = vmatprep.subr.bf16.mxu1 (!%p141_p9), %v3178_v2  ;;  %2836 = vmatprep.subr.bf16.mxu0 (!%p141_p9), %v3179_v3  ;;  %v363_v10 = vsel (!%p141_p9), %vm246_vm0, %v3181_v5, 0  ;;  %v3193_v17 = vld [vmem:[%s3852_s1 + $0x30] sm:$0xff] (!%p141_p9)   ;;  %v3194_v19 = vld [vmem:[%s3852_s1 + $0x24] ss:$0 sps:$4 sm:$0x33] (!%p141_p9)   ;;  %v3202_v30 = vld [vmem:[%s3852_s1 + $0x8] sm:$0xff] (!%p141_p9)  }
  0x11   : > { %v3195_v21 = vld [vmem:[%s3852_s1 + $0x38] ss:$0 sps:$4 sm:$0x33] (!%p141_p9)   ;;  %v674_v22 = vsel (!%p141_p9), %vm246_vm0, %v3194_v19, 0  ;;  %v3200_v26 = vld [vmem:[%s3852_s1] sm:$0xff] (!%p141_p9)   ;;  %v3213_v42 = vld [vmem:[%s3852_s1 + $0x28] sm:$0xff] (!%p141_p9)  }
  0x12   : > { %v493_v24 = vsel (!%p141_p9), %vm246_vm0, %v3195_v21, 0  ;;  %v3201_v27 = vld [vmem:[%s3852_s1 + $0x14] sm:$0xff] (!%p141_p9)   ;;  %v3207_v33 = vld [vmem:[%s3852_s1 + $0x1c] sm:$0xff] (!%p141_p9)   ;;  %v3208_v34 = vld [vmem:[%s3852_s1 + $0x10] ss:$0 sps:$4 sm:$0x33] (!%p141_p9)  }
  0x13   : > { %2823 = vmatpush3.bf16.msra.mxu1 (!%p141_p9), %v3178_v2  ;;  %2837 = vmatpush3.bf16.msra.mxu0 (!%p141_p9), %v3179_v3  ;;  %v3209_v35 = vld [vmem:[%s3852_s1 + $0x24] ss:$0 sps:$4 sm:$0x33] (!%p141_p9)   ;;  %v789_v38 = vsel (!%p141_p9), %vm246_vm0, %v3208_v34, 0  ;;  %v3216_v46 = vld [vmem:[%s3852_s1 + $0x30] sm:$0xff] (!%p141_p9)   ;;  %v3221_v49 = vld [vmem:[%s3852_s1 + $0x8] sm:$0xff] (!%p141_p9)  }
  0x14   : > { %3116 = vmatprep.subr.msk.bf16.mxu1 (!%p141_p9), %vm246_vm0, %v3180_v4  ;;  %3117 = vmatprep.subr.msk.bf16.mxu0 (!%p141_p9), %vm246_vm0, %v3181_v5  ;;  %v1099_v41 = vsel (!%p141_p9), %vm246_vm0, %v3209_v35, 0  ;;  %v3215_v43 = vld [vmem:[%s3852_s1] sm:$0xff] (!%p141_p9)   ;;  %v3222_v50 = vld [vmem:[%s3852_s1 + $0x38] ss:$0 sps:$4 sm:$0x33] (!%p141_p9)   ;;  %v3229_v59 = vld [vmem:[%s3852_s1 + $0x28] sm:$0xff] (!%p141_p9)  }
  0x15   : > { %s165_s5 = scalar_select %p164_p10, %s3389_s16, 1  ;;  %v3223_v51 = vld [vmem:[%s3852_s1 + $0x10] ss:$0 sps:$4 sm:$0x33]   ;;  %v918_v55 = vsel %vm246_vm0, %v3222_v50, 0  ;;  %v3228_v58 = vld [vmem:[%s3852_s1 + $0x14] sm:$0xff]  }
  0x16   : > { %v1214_v57 = vsel %vm246_vm0, %v3223_v51, 0  ;;  %v3230_v62 = vld [vmem:[%s3852_s1 + $0x1c] sm:$0xff]   ;;  %v3235_v1 = vld [vmem:[%s3852_s1 + $0x30] sm:$0xff]   ;;  %v3236_v2 = vld [vmem:[%s3852_s1 + $0x24] ss:$0 sps:$4 sm:$0x33]  }
  0x17   : > { %s3133_s10 = smul.u32 352, %s165_s5  ;;  %2825 = vmatpush3.bf16.msra.mxu1 %v248_v8  ;;  %2839 = vmatpush3.bf16.msra.mxu0 %v363_v10  ;;  %v3237_v3 = vld [vmem:[%s3852_s1 + $0x38] ss:$0 sps:$4 sm:$0x33]   ;;  %v3242_v10 = vld [vmem:[%s3852_s1] sm:$0xff]   ;;  %s161_s6 = sand.u32 1, %s3335_s13  }
  0x18   : > { %2862 = vmatprep.subr.bf16.mxu1 %v3186_v6  ;;  %2848 = vmatprep.subr.bf16.mxu0 %v3187_v7  ;;  %s3132_s7 = smul.u32 320, %s161_s6  ;;  %s3810_s20 = scalar_lea.sflag [#allocation3], %s161_s6 }
  0x19   : > { %s3442_s24 = scalar_lea.vmem %s3851_s0, %s3133_s10  ;;  %s3134_s10 = smul.u32 5120, %s3389_s16 }
  0x1a   : > { %v3182_v9 = vld [vmem:[%s3442_s24 + $0x20] sm:$0xff]   ;;  %v3184_v12 = vld [vmem:[%s3442_s24 + $0x28] sm:$0xff]   ;;  %v3189_v15 = vld [vmem:[%s3442_s24 + $0x30] sm:$0xff]   ;;  %s3345_s26 = smov [#allocation2]  }
  0x1b   : > { %v3183_v11 = vld [vmem:[%s3442_s24] sm:$0xff]   ;;  %2826 = vmatprep.mubr.msk.bf16.mxu1 %vm233_vm1, %v3182_v9  ;;  %v3185_v14 = vld [vmem:[%s3442_s24 + $0x8] sm:$0xff]   ;;  %v3190_v16 = vld [vmem:[%s3442_s24 + $0x10] sm:$0xff]   ;;  %v1343_v9 = vsel %vm246_vm0, %v3237_v3, 0  ;;  %s3799_s19 = scalar_lea.hbm %s3854_s3, %s3134_s10  ;;  %s3285_s27 = sshll.u32 %s3345_s26, 4  ;;  %s3286_s27 = int_to_ptr.vmem [resolvable:$false] %s3285_s27 }
  0x1c   : > { %2840 = vmatprep.mubr.msk.bf16.mxu0 %vm233_vm1, %v3183_v11  ;;  %2827 = vmatmul.mubr.msk.bf16.vlgmr.msra.gmra.mrb[0].mxu1 %vm233_vm1, %v3184_v12  ;;  %v3191_v18 = vld [vmem:[%s3442_s24 + $0x38] sm:$0xff]   ;;  %v3196_v23 = vld [vmem:[%s3442_s24 + $0x40] sm:$0xff]   ;;  %v3198_v28 = vld [vmem:[%s3442_s24 + $0x48] sm:$0xff]   ;;  %s3287_s28 = scalar_lea.vmem %s3286_s27, 10240 }
  0x1d   : > { %2841 = vmatmul.mubr.msk.bf16.vlgmr.msra.gmra.mrb[0].mxu0 %vm233_vm1, %v3185_v14  ;;  %2863 = vmatpush3.bf16.msra.mxu1 %v3186_v6  ;;  %v3192_v20 = vld [vmem:[%s3442_s24 + $0x18] sm:$0xff]   ;;  %v3197_v25 = vld [vmem:[%s3442_s24 + $0x60] sm:$0xff]   ;;  %v3199_v29 = vld [vmem:[%s3442_s24 + $0x68] sm:$0xff]  }
  0x1e   : > { %2849 = vmatpush3.bf16.msra.mxu0 %v3187_v7  ;;  %2864 = vmatprep.subr.bf16.mxu1 %v3188_v13  ;;  %v3203_v31 = vld [vmem:[%s3442_s24 + $0x50] sm:$0xff]   ;;  %v3205_v36 = vld [vmem:[%s3442_s24 + $0x58] sm:$0xff]   ;;  %v3210_v39 = vld [vmem:[%s3442_s24 + $0x40] sm:$0xff]   ;;  %v1524_v7 = vsel %vm246_vm0, %v3236_v2, 0 }
  0x1f   : > { %2830 = vmatprep.mubr.msk.bf16.mxu1 %vm233_vm1, %v3189_v15  ;;  %2844 = vmatprep.mubr.msk.bf16.mxu0 %vm233_vm1, %v3190_v16  ;;  %v3204_v32 = vld [vmem:[%s3442_s24 + $0x70] sm:$0xff]   ;;  %v3206_v37 = vld [vmem:[%s3442_s24 + $0x78] sm:$0xff]   ;;  %v3211_v40 = vld [vmem:[%s3442_s24 + $0xa0] sm:$0xff]  }
  0x20   : > { %2850 = vmatprep.subr.bf16.mxu0 %v3193_v17  ;;  %v3212_v44 = vld [vmem:[%s3442_s24 + $0x48] sm:$0xff]   ;;  %v3217_v47 = vld [vmem:[%s3442_s24 + $0x50] sm:$0xff]   ;;  %v3219_v52 = vld [vmem:[%s3442_s24 + $0x58] sm:$0xff]  }
  0x21   : > { %2865 = vmatpush3.bf16.msra.mxu1 %v3188_v13  ;;  %v3214_v45 = vld [vmem:[%s3442_s24 + $0xa8] sm:$0xff]   ;;  %v3218_v48 = vld [vmem:[%s3442_s24 + $0xb0] sm:$0xff]   ;;  %v3220_v53 = vld [vmem:[%s3442_s24 + $0xb8] sm:$0xff]  }
  0x22   : > { %2851 = vmatpush3.bf16.msra.mxu0 %v3193_v17  ;;  %3119 = vmatprep.subr.msk.bf16.mxu1 %vm246_vm0, %v3194_v19  ;;  %v3224_v54 = vld [vmem:[%s3442_s24 + $0x80] sm:$0xff]   ;;  %v3226_v60 = vld [vmem:[%s3442_s24 + $0x88] sm:$0xff]   ;;  %v3231_v63 = vld [vmem:[%s3442_s24 + $0x90] sm:$0xff]  }
  0x23   : > { %3118 = vmatprep.subr.msk.bf16.mxu0 %vm246_vm0, %v3195_v21  ;;  %v3225_v56 = vld [vmem:[%s3442_s24 + $0x80] sm:$0xff]   ;;  %v3227_v61 = vld [vmem:[%s3442_s24 + $0x88] sm:$0xff]   ;;  %v3232_v0 = vld [vmem:[%s3442_s24 + $0x90] sm:$0xff]  }
  0x24   : > { %2831 = vmatmul.mubr.msk.bf16.gmra.mrb[4].mxu1 %vm233_vm1, %v3191_v18  ;;  %v3233_v4 = vld [vmem:[%s3442_s24 + $0x98] sm:$0xff]   ;;  %v3238_v6 = vld [vmem:[%s3442_s24 + $0xc0] sm:$0xff]   ;;  %v3240_v12 = vld [vmem:[%s3442_s24 + $0xc8] sm:$0xff]  }
  0x25   : > { %2845 = vmatmul.mubr.msk.bf16.gmra.mrb[4].mxu0 %vm233_vm1, %v3192_v20  ;;  %2867 = vmatpush3.bf16.msra.mxu1 %v674_v22  ;;  %v3234_v5 = vld [vmem:[%s3442_s24 + $0x98] sm:$0xff]   ;;  %v3239_v8 = vld [vmem:[%s3442_s24 + $0xe0] sm:$0xff]   ;;  %v3241_v13 = vld [vmem:[%s3442_s24 + $0xe8] sm:$0xff]  }
  0x26   : > { %2853 = vmatpush3.bf16.msra.mxu0 %v493_v24  ;;  %2854 = vmatprep.mubr.msk.bf16.mxu0 %vm233_vm1, %v3196_v23  ;;  %v3243_v11 = vld [vmem:[%s3852_s1 + $0x14] sm:$0xff]   ;;  %v3244_v14 = vld [vmem:[%s3852_s1 + $0x8] sm:$0xff]   ;;  %v3249_v17 = vld [vmem:[%s3852_s1 + $0x1c] sm:$0xff]  }
  0x27   : > { %2868 = vmatprep.mubr.msk.bf16.mxu1 %vm233_vm1, %v3197_v25  ;;  %2876 = vmatprep.subr.bf16.mxu1 %v3200_v26  ;;  %v3245_v15 = vld [vmem:[%s3442_s24 + $0xd0] sm:$0xff]   ;;  %v3251_v19 = vld [vmem:[%s3852_s1 + $0x24] ss:$0 sps:$4 sm:$0x33]   ;;  %v3248_v20 = vld [vmem:[%s3442_s24 + $0xf8] sm:$0xff]  }
  0x28   : > { %2904 = vmatprep.subr.bf16.mxu0 %v3201_v27  ;;  %v3246_v16 = vld [vmem:[%s3442_s24 + $0xf0] sm:$0xff]   ;;  %v3247_v21 = vld [vmem:[%s3442_s24 + $0xd8] sm:$0xff]   ;;  %v3252_v23 = vld [vmem:[%s3442_s24 + $0xc0] sm:$0xff]   ;;  %v1949_v24 = vsel %vm246_vm0, %v3251_v19, 0 }
  0x29   : > { %v3250_v18 = vld [vmem:[%s3852_s1 + $0x10] ss:$0 sps:$4 sm:$0x33]   ;;  %v3253_v25 = vld [vmem:[%s3442_s24 + $0x120] sm:$0xff]  }
  0x2a   : > { %v1639_v22 = vsel %vm246_vm0, %v3250_v18, 0 }
  0x2c   : > { %2869 = vmatmul.mubr.msk.bf16.vlgmr.msra.gmra.mrb[8].mxu1 %vm233_vm1, %v3199_v29  ;;  %v3256_v29 = vld [vmem:[%s3442_s24 + $0x128] sm:$0xff]  }
  0x2d   : > { %2855 = vmatmul.mubr.msk.bf16.vlgmr.msra.gmra.mrb[0].mxu0 %vm233_vm1, %v3198_v28  ;;  %2877 = vmatpush3.bf16.msra.mxu1 %v3200_v26  ;;  %v3255_v26 = vld [vmem:[%s3852_s1 + $0x28] sm:$0xff]  }
  0x2e   : > { %2905 = vmatpush3.bf16.msra.mxu0 %v3201_v27  ;;  %2878 = vmatprep.subr.bf16.mxu1 %v3202_v30  ;;  %v3257_v27 = vld [vmem:[%s3852_s1] sm:$0xff]   ;;  %v3254_v28 = vld [vmem:[%s3442_s24 + $0xc8] sm:$0xff]  }
  0x2f   : > { %2858 = vmatprep.mubr.msk.bf16.mxu0 %vm233_vm1, %v3203_v31  ;;  %2872 = vmatprep.mubr.msk.bf16.mxu1 %vm233_vm1, %v3204_v32  ;;  %v3259_v31 = vld [vmem:[%s3442_s24 + $0xd0] sm:$0xff]  }
  0x30   : > { %2906 = vmatprep.subr.bf16.mxu0 %v3207_v33  ;;  %v3260_v32 = vld [vmem:[%s3442_s24 + $0x130] sm:$0xff]  }
  0x31   : > { %2879 = vmatpush3.bf16.msra.mxu1 %v3202_v30  ;;  %v3258_v30 = vld [vmem:[%s3852_s1 + $0x30] sm:$0xff]  }
  0x32   : > { %2907 = vmatpush3.bf16.msra.mxu0 %v3207_v33  ;;  %3120 = vmatprep.subr.msk.bf16.mxu1 %vm246_vm0, %v3208_v34  ;;  %v3263_v33 = vld [vmem:[%s3852_s1 + $0x8] sm:$0xff]   ;;  %v3264_v34 = vld [vmem:[%s3852_s1 + $0x38] ss:$0 sps:$4 sm:$0x33]  }
  0x33   : > { %3122 = vmatprep.subr.msk.bf16.mxu0 %vm246_vm0, %v3209_v35  ;;  %v3265_v35 = vld [vmem:[%s3852_s1 + $0x10] ss:$0 sps:$4 sm:$0x33]  }
  0x34   : > { %2873 = vmatmul.mubr.msk.bf16.gmra.mrb[12].mxu1 %vm233_vm1, %v3206_v37  ;;  %v3262_v37 = vld [vmem:[%s3442_s24 + $0x138] sm:$0xff]  }
  0x35   : > { %2859 = vmatmul.mubr.msk.bf16.gmra.mrb[4].mxu0 %vm233_vm1, %v3205_v36  ;;  %2881 = vmatpush3.bf16.msra.mxu1 %v789_v38  ;;  %v3261_v36 = vld [vmem:[%s3442_s24 + $0xd8] sm:$0xff]   ;;  %v1768_v38 = vsel %vm246_vm0, %v3264_v34, 0 }
  0x36   : > { %2909 = vmatpush3.bf16.msra.mxu0 %v1099_v41  ;;  %2882 = vmatprep.mubr.msk.bf16.mxu1 %vm233_vm1, %v3210_v39  ;;  %v3266_v39 = vld [vmem:[%s3442_s24 + $0x100] sm:$0xff]  }
  0x37   : > { %2910 = vmatprep.mubr.msk.bf16.mxu0 %vm233_vm1, %v3211_v40  ;;  %2890 = vmatprep.subr.bf16.mxu1 %v3213_v42  ;;  %v2064_v40 = vsel %vm246_vm0, %v3265_v35, 0  ;;  %v3267_v41 = vld [vmem:[%s3442_s24 + $0x100] sm:$0xff]  }
  0x38   : > { %2918 = vmatprep.subr.bf16.mxu0 %v3215_v43 }
  0x3c   : > { %2883 = vmatmul.mubr.msk.bf16.vlgmr.msra.gmra.mrb[8].mxu1 %vm233_vm1, %v3212_v44  ;;  %v3269_v44 = vld [vmem:[%s3442_s24 + $0x108] sm:$0xff]  }
  0x3d   : > { %2911 = vmatmul.mubr.msk.bf16.vlgmr.msra.gmra.mrb[8].mxu0 %vm233_vm1, %v3214_v45  ;;  %2891 = vmatpush3.bf16.msra.mxu1 %v3213_v42  ;;  %v3270_v42 = vld [vmem:[%s3852_s1 + $0x28] sm:$0xff]   ;;  %v3271_v45 = vld [vmem:[%s3852_s1 + $0x30] sm:$0xff]  }
  0x3e   : > { %2919 = vmatpush3.bf16.msra.mxu0 %v3215_v43  ;;  %2892 = vmatprep.subr.bf16.mxu1 %v3216_v46  ;;  %v3268_v43 = vld [vmem:[%s3442_s24 + $0x108] sm:$0xff]  }
  0x3f   : > { %2886 = vmatprep.mubr.msk.bf16.mxu1 %vm233_vm1, %v3217_v47  ;;  %2914 = vmatprep.mubr.msk.bf16.mxu0 %vm233_vm1, %v3218_v48  ;;  %v3273_v47 = vld [vmem:[%s3442_s24 + $0x110] sm:$0xff]   ;;  %v3276_v48 = vld [vmem:[%s3852_s1 + $0x38] ss:$0 sps:$4 sm:$0x33]  }
  0x40   : > { %2920 = vmatprep.subr.bf16.mxu0 %v3221_v49 }
  0x41   : > { %2893 = vmatpush3.bf16.msra.mxu1 %v3216_v46  ;;  %v3272_v46 = vld [vmem:[%s3442_s24 + $0x110] sm:$0xff]  }
  0x42   : > { %2921 = vmatpush3.bf16.msra.mxu0 %v3221_v49  ;;  %3121 = vmatprep.subr.msk.bf16.mxu1 %vm246_vm0, %v3222_v50  ;;  %v3274_v49 = vld [vmem:[%s3442_s24 + $0x118] sm:$0xff]  }
  0x43   : > { %3123 = vmatprep.subr.msk.bf16.mxu0 %vm246_vm0, %v3223_v51  ;;  %v3275_v50 = vld [vmem:[%s3442_s24 + $0x118] sm:$0xff]   ;;  %v2193_v51 = vsel %vm246_vm0, %v3276_v48, 0 }
  0x44   : > { %2887 = vmatmul.mubr.msk.bf16.gmra.mrb[12].mxu1 %vm233_vm1, %v3219_v52  ;;  %v3277_v52 = vld [vmem:[%s3442_s24 + $0x140] sm:$0xff]  }
  0x45   : > { %2915 = vmatmul.mubr.msk.bf16.gmra.mrb[12].mxu0 %vm233_vm1, %v3220_v53  ;;  %2895 = vmatpush3.bf16.msra.mxu1 %v918_v55  ;;  %v3278_v53 = vld [vmem:[%s3442_s24 + $0x150] sm:$0xff]   ;;  %v3279_v55 = vld [vmem:[%s3442_s24 + $0x148] sm:$0xff]  }
  0x46   : > { %2923 = vmatpush3.bf16.msra.mxu0 %v1214_v57  ;;  %2896 = vmatprep.mubr.msk.bf16.mxu1 %vm233_vm1, %v3224_v54  ;;  %v3280_v54 = vld [vmem:[%s3442_s24 + $0x158] sm:$0xff]   ;;  %s3721_s24 = scalar_lea.vmem [#allocation2], %s3132_s7 }
  0x47   : > { %2924 = vmatprep.mubr.msk.bf16.mxu0 %vm233_vm1, %v3225_v56  ;;  %2946 = vmatprep.subr.bf16.mxu1 %v3228_v58  ;;  %s2313_s11 = sshll.u32 %s3721_s24, 4  ;;  %s3801_s11 = int_to_ptr.vmem [resolvable:$true] %s2313_s11 }
  0x48   : > { %2932 = vmatprep.subr.bf16.mxu0 %v3229_v59  ;;  %s3281_s25 = scalar_lea.vmem %s3801_s11, 5120  ;;  %p3288_p0 = scmp.lt.s32.totalorder %s3801_s11, %s3286_s27 }
  0x49   : > { %p3282_p11 = scmp.ne.s32.totalorder %s3801_s11, %s3281_s25  ;;  %p3289_p1 = scmp.lt.s32.totalorder %s3287_s28, %s3281_s25 }
  0x4b   : > { %p3283_p12 = pnand %p3282_p11, %p3406_p5  ;;  %p3290_p2 = por %p3289_p1, %p3288_p0 }
  0x4c   : > { %2897 = vmatmul.mubr.msk.bf16.vlgmr.msra.gmra.mrb[8].mxu1 %vm233_vm1, %v3226_v60 }
  0x4d   : > { %2925 = vmatmul.mubr.msk.bf16.vlgmr.msra.gmra.mrb[8].mxu0 %vm233_vm1, %v3227_v61  ;;  %2947 = vmatpush3.bf16.msra.mxu1 %v3228_v58  ;;  %p3284_p13 = pneg %p3283_p12 }
  0x4e   : > { %2933 = vmatpush3.bf16.msra.mxu0 %v3229_v59  ;;  %2948 = vmatprep.subr.bf16.mxu1 %v3230_v62 }
  0x4f   : > { %2900 = vmatprep.mubr.msk.bf16.mxu1 %vm233_vm1, %v3231_v63  ;;  %2928 = vmatprep.mubr.msk.bf16.mxu0 %vm233_vm1, %v3232_v0  ;;  %p3291_p3 = pnand %p3290_p2, %p3284_p13 }
  0x50   : > { %2934 = vmatprep.subr.bf16.mxu0 %v3235_v1 }
  0x51   : > { %2949 = vmatpush3.bf16.msra.mxu1 %v3230_v62 }
  0x52   : > { %2935 = vmatpush3.bf16.msra.mxu0 %v3235_v1  ;;  %3125 = vmatprep.subr.msk.bf16.mxu1 %vm246_vm0, %v3236_v2  ;;  %v3715_v1 = vld [vmem:[%s3853_s2] ss:$0 sm:$0xff] }
  0x53   : > { %3124 = vmatprep.subr.msk.bf16.mxu0 %vm246_vm0, %v3237_v3 }
  0x54   : > { %2901 = vmatmul.mubr.msk.bf16.gmra.mrb[12].mxu1 %vm233_vm1, %v3233_v4 }
  0x55   : > { %2929 = vmatmul.mubr.msk.bf16.gmra.mrb[12].mxu0 %vm233_vm1, %v3234_v5  ;;  %2951 = vmatpush3.bf16.msra.mxu1 %v1524_v7 }
  0x56   : > { %2937 = vmatpush3.bf16.msra.mxu0 %v1343_v9  ;;  %2938 = vmatprep.mubr.msk.bf16.mxu0 %vm233_vm1, %v3238_v6 }
  0x57   : > { %2952 = vmatprep.mubr.msk.bf16.mxu1 %vm233_vm1, %v3239_v8  ;;  %2960 = vmatprep.subr.bf16.mxu1 %v3242_v10 }
  0x58   : > { %2988 = vmatprep.subr.bf16.mxu0 %v3243_v11 }
  0x5c   : > { %2953 = vmatmul.mubr.msk.bf16.vlgmr.msra.gmra.mrb[16].mxu1 %vm233_vm1, %v3241_v13 }
  0x5d   : > { %2939 = vmatmul.mubr.msk.bf16.vlgmr.msra.gmra.mrb[8].mxu0 %vm233_vm1, %v3240_v12  ;;  %2961 = vmatpush3.bf16.msra.mxu1 %v3242_v10 }
  0x5e   : > { %2989 = vmatpush3.bf16.msra.mxu0 %v3243_v11  ;;  %2962 = vmatprep.subr.bf16.mxu1 %v3244_v14 }
  0x5f   : > { %2942 = vmatprep.mubr.msk.bf16.mxu0 %vm233_vm1, %v3245_v15  ;;  %2956 = vmatprep.mubr.msk.bf16.mxu1 %vm233_vm1, %v3246_v16 }
  0x60   : > { %2990 = vmatprep.subr.bf16.mxu0 %v3249_v17 }
  0x61   : > { %2963 = vmatpush3.bf16.msra.mxu1 %v3244_v14 }
  0x62   : > { %2991 = vmatpush3.bf16.msra.mxu0 %v3249_v17  ;;  %3126 = vmatprep.subr.msk.bf16.mxu1 %vm246_vm0, %v3250_v18 }
  0x63   : > { %3128 = vmatprep.subr.msk.bf16.mxu0 %vm246_vm0, %v3251_v19 }
  0x64   : > { %2957 = vmatmul.mubr.msk.bf16.gmra.mrb[20].mxu1 %vm233_vm1, %v3248_v20 }
  0x65   : > { %2943 = vmatmul.mubr.msk.bf16.gmra.mrb[12].mxu0 %vm233_vm1, %v3247_v21  ;;  %2965 = vmatpush3.bf16.msra.mxu1 %v1639_v22 }
  0x66   : > { %2993 = vmatpush3.bf16.msra.mxu0 %v1949_v24  ;;  %2966 = vmatprep.mubr.msk.bf16.mxu1 %vm233_vm1, %v3252_v23 }
  0x67   : > { %2994 = vmatprep.mubr.msk.bf16.mxu0 %vm233_vm1, %v3253_v25  ;;  %2974 = vmatprep.subr.bf16.mxu1 %v3255_v26 }
  0x68   : > { %3002 = vmatprep.subr.bf16.mxu0 %v3257_v27 }
  0x6c   : > { %2967 = vmatmul.mubr.msk.bf16.vlgmr.msra.gmra.mrb[16].mxu1 %vm233_vm1, %v3254_v28 }
  0x6d   : > { %2995 = vmatmul.mubr.msk.bf16.vlgmr.msra.gmra.mrb[16].mxu0 %vm233_vm1, %v3256_v29  ;;  %2975 = vmatpush3.bf16.msra.mxu1 %v3255_v26 }
  0x6e   : > { %3003 = vmatpush3.bf16.msra.mxu0 %v3257_v27  ;;  %2976 = vmatprep.subr.bf16.mxu1 %v3258_v30 }
  0x6f   : > { %2970 = vmatprep.mubr.msk.bf16.mxu1 %vm233_vm1, %v3259_v31  ;;  %2998 = vmatprep.mubr.msk.bf16.mxu0 %vm233_vm1, %v3260_v32 }
  0x70   : > { %3004 = vmatprep.subr.bf16.mxu0 %v3263_v33 }
  0x71   : > { %2977 = vmatpush3.bf16.msra.mxu1 %v3258_v30 }
  0x72   : > { %3005 = vmatpush3.bf16.msra.mxu0 %v3263_v33  ;;  %3127 = vmatprep.subr.msk.bf16.mxu1 %vm246_vm0, %v3264_v34 }
  0x73   : > { %3129 = vmatprep.subr.msk.bf16.mxu0 %vm246_vm0, %v3265_v35 }
  0x74   : > { %2971 = vmatmul.mubr.msk.bf16.gmra.mrb[20].mxu1 %vm233_vm1, %v3261_v36 }
  0x75   : > { %2999 = vmatmul.mubr.msk.bf16.gmra.mrb[20].mxu0 %vm233_vm1, %v3262_v37  ;;  %2979 = vmatpush3.bf16.msra.mxu1 %v1768_v38 }
  0x76   : > { %3007 = vmatpush3.bf16.msra.mxu0 %v2064_v40  ;;  %2980 = vmatprep.mubr.msk.bf16.mxu1 %vm233_vm1, %v3266_v39 }
  0x77   : > { %3008 = vmatprep.mubr.msk.bf16.mxu0 %vm233_vm1, %v3267_v41  ;;  %3030 = vmatprep.subr.bf16.mxu1 %v3270_v42 }
  0x78   : > { %3016 = vmatprep.subr.bf16.mxu0 %v3270_v42 }
  0x7c   : > { %2981 = vmatmul.mubr.msk.bf16.vlgmr.msra.gmra.mrb[16].mxu1 %vm233_vm1, %v3268_v43 }
  0x7d   : > { %3009 = vmatmul.mubr.msk.bf16.vlgmr.msra.gmra.mrb[16].mxu0 %vm233_vm1, %v3269_v44  ;;  %3033 = vmatpush3.bf16.msra.mxu1 %v3270_v42 }
  0x7e   : > { %3017 = vmatpush3.bf16.msra.mxu0 %v3270_v42  ;;  %3031 = vmatprep.subr.bf16.mxu1 %v3271_v45 }
  0x7f   : > { %2984 = vmatprep.mubr.msk.bf16.mxu1 %vm233_vm1, %v3272_v46  ;;  %3012 = vmatprep.mubr.msk.bf16.mxu0 %vm233_vm1, %v3273_v47 }
  0x80   : > { %3018 = vmatprep.subr.bf16.mxu0 %v3271_v45 }
  0x81   : > { %3034 = vmatpush3.bf16.msra.mxu1 %v3271_v45 }
  0x82   : > { %3019 = vmatpush3.bf16.msra.mxu0 %v3271_v45  ;;  %3131 = vmatprep.subr.msk.bf16.mxu1 %vm246_vm0, %v3276_v48 }
  0x83   : > { %3130 = vmatprep.subr.msk.bf16.mxu0 %vm246_vm0, %v3276_v48 }
  0x84   : > { %2985 = vmatmul.mubr.msk.bf16.gmra.mrb[20].mxu1 %vm233_vm1, %v3274_v49 }
  0x85   : > { %3013 = vmatmul.mubr.msk.bf16.gmra.mrb[20].mxu0 %vm233_vm1, %v3275_v50  ;;  %3035 = vmatpush3.bf16.msra.mxu1 %v2193_v51 }
  0x86   : > { %3021 = vmatpush3.bf16.msra.mxu0 %v2193_v51  ;;  %3022 = vmatprep.mubr.msk.bf16.mxu0 %vm233_vm1, %v3277_v52 }
  0x87   : > { %3026 = vmatprep.mubr.msk.bf16.mxu1 %vm233_vm1, %v3278_v53 }
  0x8c   : > { %3027 = vmatmul.mubr.msk.bf16.vlgmr.msra.gmra.mrb[24].mxu1 %vm233_vm1, %v3280_v54 }
  0x8d   : > { %3023 = vmatmul.mubr.msk.bf16.vlgmr.msra.gmra.mrb[16].mxu0 %vm233_vm1, %v3279_v55 }
  0xef   : > { %v2828_v56 = vpop.f32.mrb[0].mxu1 }
  0xf0   : > { %v284_v57 = vpop.f32.mrb[1].mxu1 }
  0xf1   : > { %v2829_v58 = vpop.f32.mrb[2].mxu1 }
  0xf2   : > { %v287_v59 = vpop.f32.mrb[3].mxu1 }
  0xf7   : > { %v2832_v60 = vpop.f32.mrb[4].mxu1 }
  0xf8   : > { %v300_v61 = vpop.f32.mrb[5].mxu1 }
  0xf9   : > { %v2833_v62 = vpop.f32.mrb[6].mxu1 }
  0xfa   : > { %v303_v63 = vpop.f32.mrb[7].mxu1 }
 0x100   : > { %v2856_v0 = vpop.f32.mrb[0].mxu0 }
 0x101   : > { %v3036_v2 = vadd.f32 %v2856_v0, %v2828_v56  ;;  %v529_v3 = vpop.f32.mrb[1].mxu0 }
 0x102   : > { %v3037_v4 = vadd.f32 %v529_v3, %v284_v57  ;;  %v2857_v5 = vpop.f32.mrb[2].mxu0 }
 0x103   : > { %v577_v6 = vadd.f32 %v3036_v2, %v3715_v1  ;;  %v3038_v7 = vadd.f32 %v2857_v5, %v2829_v58  ;;  %v532_v8 = vpop.f32.mrb[3].mxu0 }
 0x104   : > { %v575_v9 = vadd.f32 %v3037_v4, %v3715_v1  ;;  %v3039_v10 = vadd.f32 %v532_v8, %v287_v59 }
 0x105   : > { %v585_v11 = vmax.f32 %v577_v6, 0.0  ;;  %v578_v12 = vadd.f32 %v3038_v7, %v3715_v1 }
 0x106   : > { %v583_v13 = vmax.f32 %v575_v9, 0.0  ;;  %v576_v14 = vadd.f32 %v3039_v10, %v3715_v1 }
 0x107   : > { %593 = vst [vmem:[%s3721_s24 + $0x10] sm:$0xff] %v585_v11  ;;  %v586_v15 = vmax.f32 %v578_v12, 0.0 }
 0x108   : > { %591 = vst [vmem:[%s3721_s24] sm:$0xff] %v583_v13  ;;  %v584_v16 = vmax.f32 %v576_v14, 0.0  ;;  %v2860_v17 = vpop.f32.mrb[4].mxu0 }
 0x109   : > { %594 = vst [vmem:[%s3721_s24 + $0x18] sm:$0xff] %v586_v15  ;;  %v3040_v18 = vadd.f32 %v2860_v17, %v2832_v60  ;;  %v545_v19 = vpop.f32.mrb[5].mxu0 }
 0x10a   : > { %592 = vst [vmem:[%s3721_s24 + $0x8] sm:$0xff] %v584_v16  ;;  %v3041_v20 = vadd.f32 %v545_v19, %v300_v61  ;;  %v2861_v21 = vpop.f32.mrb[6].mxu0 }
 0x10b   : > { %v581_v22 = vadd.f32 %v3040_v18, %v3715_v1  ;;  %v3042_v23 = vadd.f32 %v2861_v21, %v2833_v62  ;;  %v548_v24 = vpop.f32.mrb[7].mxu0 }
 0x10c   : > { %v579_v25 = vadd.f32 %v3041_v20, %v3715_v1  ;;  %v3043_v26 = vadd.f32 %v548_v24, %v303_v63 }
 0x10d   : > { %v589_v27 = vmax.f32 %v581_v22, 0.0  ;;  %v582_v28 = vadd.f32 %v3042_v23, %v3715_v1 }
 0x10e   : > { %v587_v29 = vmax.f32 %v579_v25, 0.0  ;;  %v580_v30 = vadd.f32 %v3043_v26, %v3715_v1 }
 0x10f   : > { %597 = vst [vmem:[%s3721_s24 + $0x30] sm:$0xff] %v589_v27  ;;  %v590_v31 = vmax.f32 %v582_v28, 0.0 }
 0x110   : > { %595 = vst [vmem:[%s3721_s24 + $0x20] sm:$0xff] %v587_v29  ;;  %v588_v32 = vmax.f32 %v580_v30, 0.0 }
 0x111   : > { %598 = vst [vmem:[%s3721_s24 + $0x38] sm:$0xff] %v590_v31 }
 0x112   : > { %596 = vst [vmem:[%s3721_s24 + $0x28] sm:$0xff] %v588_v32 }
 0x11f   : > { %v2898_v33 = vpop.f32.mrb[8].mxu1 }
 0x120   : > { %v1002_v34 = vadd.f32 %v2898_v33, %v3715_v1  ;;  %v954_v35 = vpop.f32.mrb[9].mxu1 }
 0x121   : > { %v1000_v36 = vadd.f32 %v3715_v1, %v954_v35  ;;  %v2899_v37 = vpop.f32.mrb[10].mxu1 }
 0x122   : > { %v1010_v38 = vmax.f32 %v1002_v34, 0.0  ;;  %v1003_v39 = vadd.f32 %v2899_v37, %v3715_v1  ;;  %v957_v40 = vpop.f32.mrb[11].mxu1 }
 0x123   : > { %v1008_v41 = vmax.f32 %v1000_v36, 0.0  ;;  %v1001_v42 = vadd.f32 %v3715_v1, %v957_v40 }
 0x124   : > { %1018 = vst [vmem:[%s3721_s24 + $0x50] sm:$0xff] %v1010_v38  ;;  %v1011_v43 = vmax.f32 %v1003_v39, 0.0 }
 0x125   : > { %1016 = vst [vmem:[%s3721_s24 + $0x40] sm:$0xff] %v1008_v41  ;;  %v1009_v44 = vmax.f32 %v1001_v42, 0.0 }
 0x126   : > { %1019 = vst [vmem:[%s3721_s24 + $0x58] sm:$0xff] %v1011_v43 }
 0x127   : > { %1017 = vst [vmem:[%s3721_s24 + $0x48] sm:$0xff] %v1009_v44  ;;  %v2902_v45 = vpop.f32.mrb[12].mxu1 }
 0x128   : > { %v1006_v46 = vadd.f32 %v2902_v45, %v3715_v1  ;;  %v970_v47 = vpop.f32.mrb[13].mxu1 }
 0x129   : > { %v1004_v48 = vadd.f32 %v3715_v1, %v970_v47  ;;  %v2903_v49 = vpop.f32.mrb[14].mxu1 }
 0x12a   : > { %v1014_v50 = vmax.f32 %v1006_v46, 0.0  ;;  %v1007_v51 = vadd.f32 %v2903_v49, %v3715_v1  ;;  %v973_v52 = vpop.f32.mrb[15].mxu1 }
 0x12b   : > { %v1012_v53 = vmax.f32 %v1004_v48, 0.0  ;;  %v1005_v54 = vadd.f32 %v3715_v1, %v973_v52 }
 0x12c   : > { %1022 = vst [vmem:[%s3721_s24 + $0x70] sm:$0xff] %v1014_v50  ;;  %v1015_v55 = vmax.f32 %v1007_v51, 0.0 }
 0x12d   : > { %1020 = vst [vmem:[%s3721_s24 + $0x60] sm:$0xff] %v1012_v53  ;;  %v1013_v56 = vmax.f32 %v1005_v54, 0.0 }
 0x12e   : > { %1023 = vst [vmem:[%s3721_s24 + $0x78] sm:$0xff] %v1015_v55 }
 0x12f   : > { %1021 = vst [vmem:[%s3721_s24 + $0x68] sm:$0xff] %v1013_v56 }
 0x130   : > { %v2940_v57 = vpop.f32.mrb[8].mxu0 }
 0x131   : > { %v1427_v58 = vadd.f32 %v2940_v57, %v3715_v1  ;;  %v1379_v59 = vpop.f32.mrb[9].mxu0 }
 0x132   : > { %v1425_v60 = vadd.f32 %v3715_v1, %v1379_v59  ;;  %v2941_v61 = vpop.f32.mrb[10].mxu0 }
 0x133   : > { %v1435_v62 = vmax.f32 %v1427_v58, 0.0  ;;  %v1428_v63 = vadd.f32 %v2941_v61, %v3715_v1  ;;  %v1382_v0 = vpop.f32.mrb[11].mxu0 }
 0x134   : > { %v1433_v2 = vmax.f32 %v1425_v60, 0.0  ;;  %v1426_v3 = vadd.f32 %v3715_v1, %v1382_v0 }
 0x135   : > { %1443 = vst [vmem:[%s3721_s24 + $0x90] sm:$0xff] %v1435_v62  ;;  %v1436_v4 = vmax.f32 %v1428_v63, 0.0 }
 0x136   : > { %1441 = vst [vmem:[%s3721_s24 + $0x80] sm:$0xff] %v1433_v2  ;;  %v1434_v5 = vmax.f32 %v1426_v3, 0.0 }
 0x137   : > { %1444 = vst [vmem:[%s3721_s24 + $0x98] sm:$0xff] %v1436_v4 }
 0x138   : > { %1442 = vst [vmem:[%s3721_s24 + $0x88] sm:$0xff] %v1434_v5  ;;  %v2944_v6 = vpop.f32.mrb[12].mxu0 }
 0x139   : > { %v1431_v7 = vadd.f32 %v2944_v6, %v3715_v1  ;;  %v1395_v8 = vpop.f32.mrb[13].mxu0 }
 0x13a   : > { %v1429_v9 = vadd.f32 %v3715_v1, %v1395_v8  ;;  %v2945_v10 = vpop.f32.mrb[14].mxu0 }
 0x13b   : > { %v1439_v11 = vmax.f32 %v1431_v7, 0.0  ;;  %v1432_v12 = vadd.f32 %v2945_v10, %v3715_v1  ;;  %v1398_v13 = vpop.f32.mrb[15].mxu0 }
 0x13c   : > { %v1437_v14 = vmax.f32 %v1429_v9, 0.0  ;;  %v1430_v15 = vadd.f32 %v3715_v1, %v1398_v13 }
 0x13d   : > { %1447 = vst [vmem:[%s3721_s24 + $0xb0] sm:$0xff] %v1439_v11  ;;  %v1440_v16 = vmax.f32 %v1432_v12, 0.0 }
 0x13e   : > { %1445 = vst [vmem:[%s3721_s24 + $0xa0] sm:$0xff] %v1437_v14  ;;  %v1438_v17 = vmax.f32 %v1430_v15, 0.0 }
 0x13f   : > { %1448 = vst [vmem:[%s3721_s24 + $0xb8] sm:$0xff] %v1440_v16 }
 0x140   : > { %1446 = vst [vmem:[%s3721_s24 + $0xa8] sm:$0xff] %v1438_v17 }
 0x14f   : > { %v2982_v18 = vpop.f32.mrb[16].mxu1 }
 0x150   : > { %v1852_v19 = vadd.f32 %v2982_v18, %v3715_v1  ;;  %v1804_v20 = vpop.f32.mrb[17].mxu1 }
 0x151   : > { %v1850_v21 = vadd.f32 %v3715_v1, %v1804_v20  ;;  %v2983_v22 = vpop.f32.mrb[18].mxu1 }
 0x152   : > { %v1860_v23 = vmax.f32 %v1852_v19, 0.0  ;;  %v1853_v24 = vadd.f32 %v2983_v22, %v3715_v1  ;;  %v1807_v25 = vpop.f32.mrb[19].mxu1 }
 0x153   : > { %v1858_v26 = vmax.f32 %v1850_v21, 0.0  ;;  %v1851_v27 = vadd.f32 %v3715_v1, %v1807_v25 }
 0x154   : > { %1868 = vst [vmem:[%s3721_s24 + $0xd0] sm:$0xff] %v1860_v23  ;;  %v1861_v28 = vmax.f32 %v1853_v24, 0.0 }
 0x155   : > { %1866 = vst [vmem:[%s3721_s24 + $0xc0] sm:$0xff] %v1858_v26  ;;  %v1859_v29 = vmax.f32 %v1851_v27, 0.0 }
 0x156   : > { %1869 = vst [vmem:[%s3721_s24 + $0xd8] sm:$0xff] %v1861_v28 }
 0x157   : > { %1867 = vst [vmem:[%s3721_s24 + $0xc8] sm:$0xff] %v1859_v29  ;;  %v2986_v30 = vpop.f32.mrb[20].mxu1 }
 0x158   : > { %v1856_v31 = vadd.f32 %v2986_v30, %v3715_v1  ;;  %v3014_v32 = vpop.f32.mrb[20].mxu0  ;;  %v1820_v33 = vpop.f32.mrb[21].mxu1 }
 0x159   : > { %v1854_v34 = vadd.f32 %v3715_v1, %v1820_v33  ;;  %v2116_v35 = vpop.f32.mrb[21].mxu0  ;;  %v2987_v36 = vpop.f32.mrb[22].mxu1 }
 0x15a   : > { %v1864_v37 = vmax.f32 %v1856_v31, 0.0  ;;  %v1857_v38 = vadd.f32 %v2987_v36, %v3715_v1  ;;  %v3015_v39 = vpop.f32.mrb[22].mxu0  ;;  %v1823_v40 = vpop.f32.mrb[23].mxu1 }
 0x15b   : > { %v1862_v41 = vmax.f32 %v1854_v34, 0.0  ;;  %v1855_v42 = vadd.f32 %v3715_v1, %v1823_v40  ;;  %v2119_v43 = vpop.f32.mrb[23].mxu0 }
 0x15c   : > { %1872 = vst [vmem:[%s3721_s24 + $0xf0] sm:$0xff] %v1864_v37  ;;  %v1865_v44 = vmax.f32 %v1857_v38, 0.0 }
 0x15d   : > { %1870 = vst [vmem:[%s3721_s24 + $0xe0] sm:$0xff] %v1862_v41  ;;  %v1863_v45 = vmax.f32 %v1855_v42, 0.0 }
 0x15e   : > { %1873 = vst [vmem:[%s3721_s24 + $0xf8] sm:$0xff] %v1865_v44 }
 0x15f   : > { %1871 = vst [vmem:[%s3721_s24 + $0xe8] sm:$0xff] %v1863_v45  ;;  %v3028_v46 = vpop.f32.mrb[24].mxu1 }
 0x160   : > { %v3024_v47 = vpop.f32.mrb[16].mxu0  ;;  %v3044_v48 = vadd.f32 %v3028_v46, %v3014_v32  ;;  %v2245_v49 = vpop.f32.mrb[25].mxu1 }
 0x161   : > { %v2277_v50 = vadd.f32 %v3024_v47, %v3715_v1  ;;  %v2229_v51 = vpop.f32.mrb[17].mxu0  ;;  %v3045_v52 = vadd.f32 %v2245_v49, %v2116_v35  ;;  %v3029_v53 = vpop.f32.mrb[26].mxu1 }
 0x162   : > { %v2281_v54 = vadd.f32 %v3044_v48, %v3715_v1  ;;  %v2275_v55 = vadd.f32 %v3715_v1, %v2229_v51  ;;  %v3025_v56 = vpop.f32.mrb[18].mxu0  ;;  %v3046_v57 = vadd.f32 %v3029_v53, %v3015_v39  ;;  %v2248_v58 = vpop.f32.mrb[27].mxu1 }
 0x163   : > { %v2285_v59 = vmax.f32 %v2277_v50, 0.0  ;;  %v2279_v60 = vadd.f32 %v3045_v52, %v3715_v1  ;;  %v2278_v61 = vadd.f32 %v3025_v56, %v3715_v1  ;;  %v2232_v62 = vpop.f32.mrb[19].mxu0  ;;  %v3047_v63 = vadd.f32 %v2248_v58, %v2119_v43 }
 0x164   : > { %v2289_v0 = vmax.f32 %v2281_v54, 0.0  ;;  %v2283_v2 = vmax.f32 %v2275_v55, 0.0  ;;  %v2282_v3 = vadd.f32 %v3046_v57, %v3715_v1  ;;  %v2276_v4 = vadd.f32 %v3715_v1, %v2232_v62 }
 0x165   : > { %2293 = vst [vmem:[%s3721_s24 + $0x110] sm:$0xff] %v2285_v59  ;;  %v2287_v5 = vmax.f32 %v2279_v60, 0.0  ;;  %v2286_v6 = vmax.f32 %v2278_v61, 0.0  ;;  %v2280_v7 = vadd.f32 %v3047_v63, %v3715_v1 }
 0x166   : > { %2297 = vst [vmem:[%s3721_s24 + $0x130] sm:$0xff] %v2289_v0  ;;  %2291 = vst [vmem:[%s3721_s24 + $0x100] sm:$0xff] %v2283_v2  ;;  %v2290_v8 = vmax.f32 %v2282_v3, 0.0  ;;  %v2284_v9 = vmax.f32 %v2276_v4, 0.0 }
 0x167   : > { %2295 = vst [vmem:[%s3721_s24 + $0x120] sm:$0xff] %v2287_v5  ;;  %2294 = vst [vmem:[%s3721_s24 + $0x118] sm:$0xff] %v2286_v6  ;;  %v2288_v10 = vmax.f32 %v2280_v7, 0.0 }
 0x168   : > { %2298 = vst [vmem:[%s3721_s24 + $0x138] sm:$0xff] %v2290_v8  ;;  %2292 = vst [vmem:[%s3721_s24 + $0x108] sm:$0xff] %v2284_v9 }
 0x169   : > { %2296 = vst [vmem:[%s3721_s24 + $0x128] sm:$0xff] %v2288_v10 }
 0x16a   : > { %3294 = shalt.err (!%p3291_p3)
}
 0x16b   : > { %s3295_s29 = scalar_lea.hbm %s3799_s19, 5120  ;;  %s3299_s5 = scalar_lea.hbm %s3854_s3, 10240 }
 0x16c   : > { %p3296_p4 = scmp.ne.s32.totalorder %s3799_s19, %s3295_s29  ;;  %p3300_p9 = scmp.lt.u32.totalorder %s3799_s19, %s3854_s3 }
 0x16d   : > { %p3301_p10 = scmp.lt.u32.totalorder %s3299_s5, %s3295_s29  ;;  %p3303_p12 = scmp.lt.u32.totalorder %s3295_s29, %s3799_s19 }
 0x16e   : > { %p3297_p7 = pnand %p3296_p4, %p3406_p5 }
 0x16f   : > { %p3302_p11 = por %p3301_p10, %p3300_p9 }
 0x170   : > { %p3298_p8 = pneg %p3297_p7 }
 0x171   : > { %p3304_p13 = por %p3303_p12, %p3302_p11 }
 0x173   : > { %p3305_p0 = pnand %p3304_p13, %p3298_p8 }
 0x175   : > { %3308 = shalt.err (!%p3305_p0)
}
 0x176   : > { %s3346_s8 = smov 128   ;;  %s3347_s9 = smov 8  }
 0x177   : > { %3135 = dma.vmem_to_hbm [thread:$0]  (%p3406_p5), %s3801_s11, 5120, %s3799_s19, %s3810_s20, %s3346_s8, %s3346_s8, %s3347_s9  }
 0x178 PF: > { %p3141_p1 = scmp.ge.s32.totalorder %s3343_s15, 2  ;;  %s2328_s24 = sand.u32 1, %s3331_s12  }
 0x179   : > { %s2329_s10 = scalar_lea.sflag [#allocation3], %s2328_s24 }
 0x17a   : > { %p3138_p2 = pnand %p3141_p1, %p3410_p6 }
 0x17c   : > { %3326 = dma.done.wait (!%p3138_p2), %s2329_s10, 5120  }
 0x17d   : > { %3328 = vsyncadd (!%p3138_p2), %s2329_s10, 4294962176  ;;  %p13_p3 = scmp.ge.s32.totalorder %s3393_s18, 4   ;;  %s3857_s12 = smov %s3335_s13 }
 0x17e   : > { %s3858_s13 = smov %s3339_s14  ;;  %s3859_s14 = smov %s3404_s21 }
 0x17f   : > { %s3860_s15 = smov %s3393_s18  ;;  %15 = sbr.rel (!%p13_p3) target bundleno = 3 (0x3), region = 79 }
 0x186   :  { %2334 = vsyncpa [#allocation3], 1 }
 0x187   :  { %2336 = vsyncpa [#allocation3 + $0x1], 1 }

</bundles_post_ra>
